<compile_context>
chip_gen: v7x
topology: tpu7x:2x2x1
jax: 0.10.0
libtpu: 0.0.40
codegen_flags: <defaults>
</compile_context>

<pallas_src>
import functools

import jax
import jax.numpy as jnp
from jax.experimental import pallas as pl
from jax.experimental.pallas import tpu as pltpu


# ---------------------------------------------------------------------------
# Kernels (one batch tile per grid step).
# ---------------------------------------------------------------------------
def _q_kernel_fused(s_ref, a_ref,
                    w1s_ref, w1a_ref, b1_ref,
                    w2_ref, b2_ref,
                    w3_ref, b3_ref,
                    q_ref):
    # Layer 1: (state | action) @ W1 + b1, split over the two inputs.
    h = (jnp.dot(s_ref[...], w1s_ref[...], preferred_element_type=jnp.float32)
         + jnp.dot(a_ref[...], w1a_ref[...], preferred_element_type=jnp.float32)
         + b1_ref[...])
    h = jnp.maximum(h, 0.0).astype(w2_ref.dtype)
    # Layer 2: block-diagonal fused hidden layer (both heads in one dot).
    h = jnp.dot(h, w2_ref[...], preferred_element_type=jnp.float32) + b2_ref[...]
    h = jnp.maximum(h, 0.0).astype(w3_ref.dtype)
    # Layer 3 (Identity): block-diagonal fused output -> (tile_b, 2).
    q_ref[...] = (jnp.dot(h, w3_ref[...], preferred_element_type=jnp.float32)
                  + b3_ref[...])


def _q_kernel_perhead(s_ref, a_ref,
                      w1s_ref, w1a_ref, b1_ref,
                      w2a_ref, w2b_ref, b2a_ref, b2b_ref,
                      w3a_ref, w3b_ref, b3_ref,
                      q_ref):
    # Layer 1 stays fused (pure concat along lanes, no zero padding).
    h1 = (jnp.dot(s_ref[...], w1s_ref[...], preferred_element_type=jnp.float32)
          + jnp.dot(a_ref[...], w1a_ref[...], preferred_element_type=jnp.float32)
          + b1_ref[...])
    h1 = jnp.maximum(h1, 0.0)
    H1 = w2a_ref.shape[0]
    h1a = h1[:, :H1].astype(w2a_ref.dtype)
    h1b = h1[:, H1:].astype(w2b_ref.dtype)
    # Layer 2: two dense per-head dots (no block-diag zero waste at H >= 128).
    h2a = jnp.maximum(
        jnp.dot(h1a, w2a_ref[...], preferred_element_type=jnp.float32)
        + b2a_ref[...], 0.0).astype(w3a_ref.dtype)
    h2b = jnp.maximum(
        jnp.dot(h1b, w2b_ref[...], preferred_element_type=jnp.float32)
        + b2b_ref[...], 0.0).astype(w3b_ref.dtype)
    # Layer 3: per-head column-slotted [H2, 2] weights -> single (tile_b, 2).
    q_ref[...] = (jnp.dot(h2a, w3a_ref[...], preferred_element_type=jnp.float32)
                  + jnp.dot(h2b, w3b_ref[...], preferred_element_type=jnp.float32)
                  + b3_ref[...])


# ---------------------------------------------------------------------------
# Wrapper-side weight packing (twin-head fusion).
# ---------------------------------------------------------------------------
def _block_diag(a, b):
    zt = jnp.zeros((a.shape[0], b.shape[1]), a.dtype)
    zb = jnp.zeros((b.shape[0], a.shape[1]), a.dtype)
    return jnp.concatenate(
        [jnp.concatenate([a, zt], axis=1),
         jnp.concatenate([zb, b], axis=1)], axis=0)


def _pack_params(params, state_dim, compute_dtype, fuse_hidden):
    (w11, b11, w12, b12, w13, b13,
     w21, b21, w22, b22, w23, b23) = params
    f32 = jnp.float32
    cd = compute_dtype
    w1 = jnp.concatenate([w11, w21], axis=1).astype(cd)   # [in_dim, 2*H1]
    w1_s = w1[:state_dim]                                  # [state_dim, 2*H1]
    w1_a = w1[state_dim:]                                  # [action_dim, 2*H1]
    b1 = jnp.concatenate([b11, b21], axis=1).astype(f32)   # [1, 2*H1]
    b3 = jnp.concatenate([b13, b23], axis=1).astype(f32)   # [1, 2]
    if fuse_hidden:
        w2 = _block_diag(w12, w22).astype(cd)               # [2*H1, 2*H2]
        b2 = jnp.concatenate([b12, b22], axis=1).astype(f32)
        w3 = _block_diag(w13, w23).astype(cd)                # [2*H2, 2]
        return (w1_s, w1_a, b1, w2, b2, w3, b3)
    # Per-head (dense) hidden path: no zero-padded weights.
    z = jnp.zeros_like(w13)                                  # [H2, 1]
    w3a = jnp.concatenate([w13, z], axis=1).astype(cd)       # col 0 = head 1
    w3b = jnp.concatenate([z, w23], axis=1).astype(cd)       # col 1 = head 2
    return (w1_s, w1_a, b1,
            w12.astype(cd), w22.astype(cd),
            b12.astype(f32), b22.astype(f32),
            w3a, w3b, b3)


# ---------------------------------------------------------------------------
# Tiling helpers.
# ---------------------------------------------------------------------------
def _round_up(x, m):
    return ((x + m - 1) // m) * m


def _num_tensorcores():
    """Best-effort TensorCore count (perf-only heuristic; safe fallback = 1)."""
    try:
        dev = jax.devices()[0]
        n = getattr(dev, "num_cores", None)
        if n is not None:
            return max(1, int(n))
        kind = str(getattr(dev, "device_kind", "")).lower()
        return 2 if any(t in kind for t in ("v7", "7x", "v4", "v5p")) else 1
    except Exception:
        return 1


# ---------------------------------------------------------------------------
# Forward pass.
# ---------------------------------------------------------------------------
def q_critic_forward(state, action, params, *,
                     compute_dtype=jnp.bfloat16, max_tile_rows=2048):
    """state: [B, state_dim], action: [B, action_dim].
    params: flat tuple (w11,b11,w12,b12,w13,b13, w21,b21,...,b23); weights [in, out].
    Returns (q1, q2), each [B, 1] float32."""
    # TODO(synk): only the 2-hidden-layer (3 linear) SAC config is supported.
    assert len(params) == 12, "expects hid_shape of length 2 (3 linear layers/head)"

    B, state_dim = state.shape
    action_dim = action.shape[1]
    H1 = params[0].shape[1]
    H2 = params[2].shape[1]
    h1x2, h2x2 = 2 * H1, 2 * H2
    # Block-diag twin-head fusion only while zero-padding waste is negligible;
    # at H >= 128 switch layers 2/3 to dense per-head dots.
    fuse_hidden = max(H1, H2) < 128

    state = state.astype(compute_dtype)
    action = action.astype(compute_dtype)
    packed = _pack_params(params, state_dim, compute_dtype, fuse_hidden)

    # ---- batch tiling: big tiles, even count on multi-TC parts ----
    n_cores = _num_tensorcores()
    n_tiles = max(n_cores, pl.cdiv(B, max_tile_rows))
    tile_b = _round_up(pl.cdiv(B, n_tiles), 8)
    n_tiles = pl.cdiv(B, tile_b)
    b_pad = n_tiles * tile_b
    if b_pad != B:
        # TODO(synk): in-kernel masked last tile would avoid this extra copy;
        # only reached when B is not a multiple of 8 (RL batches normally are).
        state = jnp.pad(state, ((0, b_pad - B), (0, 0)))
        action = jnp.pad(action, ((0, b_pad - B), (0, 0)))

    row_spec = lambda cols: pl.BlockSpec((tile_b, cols), lambda i: (i, 0))
    const_spec = lambda arr: pl.BlockSpec(arr.shape, lambda i: (0, 0))

    in_specs = ([row_spec(state_dim), row_spec(action_dim)]
                + [const_spec(p) for p in packed])
    kernel = _q_kernel_fused if fuse_hidden else _q_kernel_perhead

    flops = 2 * b_pad * ((state_dim + action_dim) * h1x2 + h1x2 * h2x2 + h2x2 * 2)
    param_bytes = sum(int(p.size) * p.dtype.itemsize for p in packed)
    bytes_acc = (state.dtype.itemsize * b_pad * (state_dim + action_dim)
                 + 4 * b_pad * 2 + param_bytes)

    q12 = pl.pallas_call(
        kernel,
        out_shape=jax.ShapeDtypeStruct((b_pad, 2), jnp.float32),
        grid_spec=pltpu.PrefetchScalarGridSpec(
            num_scalar_prefetch=0,
            grid=(n_tiles,),
            in_specs=in_specs,
            out_specs=row_spec(2),                      # lane-dense (tile_b, 2)
        ),
        compiler_params=pltpu.CompilerParams(
            dimension_semantics=("parallel",),          # shard batch across TCs
            vmem_limit_bytes=32 * 1024 * 1024,          # fits v7x scoped VMEM
        ),
        cost_estimate=pl.CostEstimate(
            flops=int(flops), transcendentals=0, bytes_accessed=int(bytes_acc)),
    )(state, action, *packed)

    q12 = q12[:B]
    return (q12[:, 0:1].astype(jnp.float32),
            q12[:, 1:2].astype(jnp.float32))


# ---------------------------------------------------------------------------
# Init (matches PyTorch nn.Linear defaults) and pure-JAX reference.
# ---------------------------------------------------------------------------
def init_linear(key, fan_in, fan_out):
    kw, kb = jax.random.split(key)
    bound = 1.0 / jnp.sqrt(jnp.float32(fan_in))
    w = jax.random.uniform(kw, (fan_in, fan_out), jnp.float32, -bound, bound)
    b = jax.random.uniform(kb, (1, fan_out), jnp.float32, -bound, bound)
    return w, b


def init_q_critic(key, state_dim, action_dim, hid_shape):
    layers = [state_dim + action_dim] + list(hid_shape) + [1]
    params = []
    for _ in range(2):                      # Q_1 and Q_2
        for j in range(len(layers) - 1):
            key, sub = jax.random.split(key)
            w, b = init_linear(sub, layers[j], layers[j + 1])
            params += [w, b]
    return tuple(params)


def _mlp3_ref(x, w1, b1, w2, b2, w3, b3):
    h = jnp.maximum(jnp.dot(x, w1) + b1, 0.0)
    h = jnp.maximum(jnp.dot(h, w2) + b2, 0.0)
    return jnp.dot(h, w3) + b3


def reference_forward(state, action, params):
    sa = jnp.concatenate([state, action], axis=1).astype(jnp.float32)
    (w11, b11, w12, b12, w13, b13,
     w21, b21, w22, b22, w23, b23) = params
    q1 = _mlp3_ref(sa, w11, b11, w12, b12, w13, b13)
    q2 = _mlp3_ref(sa, w21, b21, w22, b22, w23, b23)
    return q1, q2


if __name__ == "__main__":
    key = jax.random.PRNGKey(0)
    k_param, k_state, k_action = jax.random.split(key, 3)

    batch = 8
    state_dim = 12
    action_dim = 4
    hid_shape = (32, 32)

    params = init_q_critic(k_param, state_dim, action_dim, hid_shape)
    state = jax.random.normal(k_state, (batch, state_dim), jnp.float32)
    action = jax.random.normal(k_action, (batch, action_dim), jnp.float32)
    r1, r2 = reference_forward(state, action, params)

    # 1) f32 path (block-diagonal fused hidden layers) — exact check.
    fwd_f32 = jax.jit(functools.partial(q_critic_forward,
                                        compute_dtype=jnp.float32))
    q1, q2 = fwd_f32(state, action, params)
    jax.block_until_ready((q1, q2))
    assert q1.shape == (batch, 1) and q2.shape == (batch, 1)
    assert jnp.allclose(q1, r1, atol=1e-4, rtol=1e-4)
    assert jnp.allclose(q2, r2, atol=1e-4, rtol=1e-4)

    # 2) default bf16-MXU-operand path (f32 accumulate) — relaxed tolerance.
    fwd_bf16 = jax.jit(q_critic_forward)
    q1b, q2b = fwd_bf16(state, action, params)
    jax.block_until_ready((q1b, q2b))
    assert jnp.allclose(q1b, r1, atol=5e-2, rtol=5e-2)
    assert jnp.allclose(q2b, r2, atol=5e-2, rtol=5e-2)

    # 3) large hid_shape -> dense per-head hidden path, exact in f32.
    params_big = init_q_critic(k_param, state_dim, action_dim, (128, 128))
    rb1, rb2 = reference_forward(state, action, params_big)
    qb1, qb2 = fwd_f32(state, action, params_big)
    jax.block_until_ready((qb1, qb2))
    assert jnp.allclose(qb1, rb1, atol=1e-4, rtol=1e-4)
    assert jnp.allclose(qb2, rb2, atol=1e-4, rtol=1e-4)

    print("KERNEL_OK")
</pallas_src>

<mosaic_0001>
module attributes {stable_mosaic.version = 11 : i64} {
  func.func @_q_kernel_fused(%arg0: i32, %arg1: memref<8x12xf32, #tpu.memory_space<vmem>>, %arg2: memref<8x4xf32, #tpu.memory_space<vmem>>, %arg3: memref<12x64xf32, #tpu.memory_space<vmem>>, %arg4: memref<4x64xf32, #tpu.memory_space<vmem>>, %arg5: memref<1x64xf32, #tpu.memory_space<vmem>>, %arg6: memref<64x64xf32, #tpu.memory_space<vmem>>, %arg7: memref<1x64xf32, #tpu.memory_space<vmem>>, %arg8: memref<64x2xf32, #tpu.memory_space<vmem>>, %arg9: memref<1x2xf32, #tpu.memory_space<vmem>>, %arg10: memref<8x2xf32, #tpu.memory_space<vmem>>) attributes {dimension_semantics = [#tpu.dimension_semantics<parallel>], iteration_bounds = array<i64: 1>, scalar_prefetch = 0 : i64, scratch_operands = 0 : i64, tpu.core_type = #tpu.core_type<tc>, window_params = [{transform_indices = @transform_0, window_bounds = array<i64: 8, 12>}, {transform_indices = @transform_1, window_bounds = array<i64: 8, 4>}, {pipeline_mode = #tpu.pipeline_mode<synchronous>, transform_indices = @transform_2, window_bounds = array<i64: 12, 64>}, {pipeline_mode = #tpu.pipeline_mode<synchronous>, transform_indices = @transform_3, window_bounds = array<i64: 4, 64>}, {pipeline_mode = #tpu.pipeline_mode<synchronous>, transform_indices = @transform_4, window_bounds = array<i64: 1, 64>}, {pipeline_mode = #tpu.pipeline_mode<synchronous>, transform_indices = @transform_5, window_bounds = array<i64: 64, 64>}, {pipeline_mode = #tpu.pipeline_mode<synchronous>, transform_indices = @transform_6, window_bounds = array<i64: 1, 64>}, {pipeline_mode = #tpu.pipeline_mode<synchronous>, transform_indices = @transform_7, window_bounds = array<i64: 64, 2>}, {pipeline_mode = #tpu.pipeline_mode<synchronous>, transform_indices = @transform_8, window_bounds = array<i64: 1, 2>}, {transform_indices = @transform_9, window_bounds = array<i64: 8, 2>}]} {
    %c0 = arith.constant 0 : index
    %c0_0 = arith.constant 0 : index
    %0 = vector.load %arg1[%c0, %c0_0] : memref<8x12xf32, #tpu.memory_space<vmem>>, vector<8x12xf32>
    %c0_1 = arith.constant 0 : index
    %c0_2 = arith.constant 0 : index
    %1 = vector.load %arg3[%c0_1, %c0_2] : memref<12x64xf32, #tpu.memory_space<vmem>>, vector<12x64xf32>
    %cst = arith.constant dense<0.000000e+00> : vector<8x64xf32>
    %2 = tpu.matmul %0, %1, %cst {dimension_numbers = #tpu.dot_dimension_numbers<[1], [0], [0], [1], [0, 0, 1, 1], [], []>} : vector<8x12xf32>, vector<12x64xf32>, vector<8x64xf32> -> vector<8x64xf32>
    %c0_3 = arith.constant 0 : index
    %c0_4 = arith.constant 0 : index
    %3 = vector.load %arg2[%c0_3, %c0_4] : memref<8x4xf32, #tpu.memory_space<vmem>>, vector<8x4xf32>
    %c0_5 = arith.constant 0 : index
    %c0_6 = arith.constant 0 : index
    %4 = vector.load %arg4[%c0_5, %c0_6] : memref<4x64xf32, #tpu.memory_space<vmem>>, vector<4x64xf32>
    %cst_7 = arith.constant dense<0.000000e+00> : vector<8x64xf32>
    %5 = tpu.matmul %3, %4, %cst_7 {dimension_numbers = #tpu.dot_dimension_numbers<[1], [0], [0], [1], [0, 0, 1, 1], [], []>} : vector<8x4xf32>, vector<4x64xf32>, vector<8x64xf32> -> vector<8x64xf32>
    %6 = arith.addf %2, %5 : vector<8x64xf32>
    %c0_8 = arith.constant 0 : index
    %c0_9 = arith.constant 0 : index
    %7 = vector.load %arg5[%c0_8, %c0_9] : memref<1x64xf32, #tpu.memory_space<vmem>>, vector<1x64xf32>
    %8 = vector.broadcast %7 : vector<1x64xf32> to vector<8x64xf32>
    %9 = arith.addf %6, %8 : vector<8x64xf32>
    %cst_10 = arith.constant 0.000000e+00 : f32
    %10 = vector.broadcast %cst_10 : f32 to vector<8x64xf32>
    %11 = arith.maximumf %9, %10 : vector<8x64xf32>
    %c0_11 = arith.constant 0 : index
    %c0_12 = arith.constant 0 : index
    %12 = vector.load %arg6[%c0_11, %c0_12] : memref<64x64xf32, #tpu.memory_space<vmem>>, vector<64x64xf32>
    %cst_13 = arith.constant dense<0.000000e+00> : vector<8x64xf32>
    %13 = tpu.matmul %11, %12, %cst_13 {dimension_numbers = #tpu.dot_dimension_numbers<[1], [0], [0], [1], [0, 0, 1, 1], [], []>} : vector<8x64xf32>, vector<64x64xf32>, vector<8x64xf32> -> vector<8x64xf32>
    %c0_14 = arith.constant 0 : index
    %c0_15 = arith.constant 0 : index
    %14 = vector.load %arg7[%c0_14, %c0_15] : memref<1x64xf32, #tpu.memory_space<vmem>>, vector<1x64xf32>
    %15 = vector.broadcast %14 : vector<1x64xf32> to vector<8x64xf32>
    %16 = arith.addf %13, %15 : vector<8x64xf32>
    %cst_16 = arith.constant 0.000000e+00 : f32
    %17 = vector.broadcast %cst_16 : f32 to vector<8x64xf32>
    %18 = arith.maximumf %16, %17 : vector<8x64xf32>
    %c0_17 = arith.constant 0 : index
    %c0_18 = arith.constant 0 : index
    %19 = vector.load %arg8[%c0_17, %c0_18] : memref<64x2xf32, #tpu.memory_space<vmem>>, vector<64x2xf32>
    %cst_19 = arith.constant dense<0.000000e+00> : vector<8x2xf32>
    %20 = tpu.matmul %18, %19, %cst_19 {dimension_numbers = #tpu.dot_dimension_numbers<[1], [0], [0], [1], [0, 0, 1, 1], [], []>} : vector<8x64xf32>, vector<64x2xf32>, vector<8x2xf32> -> vector<8x2xf32>
    %c0_20 = arith.constant 0 : index
    %c0_21 = arith.constant 0 : index
    %21 = vector.load %arg9[%c0_20, %c0_21] : memref<1x2xf32, #tpu.memory_space<vmem>>, vector<1x2xf32>
    %22 = vector.broadcast %21 : vector<1x2xf32> to vector<8x2xf32>
    %23 = arith.addf %20, %22 : vector<8x2xf32>
    %c0_22 = arith.constant 0 : index
    %c0_23 = arith.constant 0 : index
    %24 = vector.load %arg10[%c0_22, %c0_23] : memref<8x2xf32, #tpu.memory_space<vmem>>, vector<8x2xf32>
    tpu.vector_store %arg10[%c0_22, %c0_23], %23 {strides = array<i32>} : memref<8x2xf32, #tpu.memory_space<vmem>>, vector<8x2xf32>,
    return
  }
  func.func @transform_0(%arg0: i32) -> (i32, i32) {
    %c0_i32 = arith.constant 0 : i32
    %c0_i32_0 = arith.constant 0 : i32
    return %arg0, %c0_i32 : i32, i32
  }
  func.func @transform_1(%arg0: i32) -> (i32, i32) {
    %c0_i32 = arith.constant 0 : i32
    %c0_i32_0 = arith.constant 0 : i32
    return %arg0, %c0_i32 : i32, i32
  }
  func.func @transform_2(%arg0: i32) -> (i32, i32) {
    %c0_i32 = arith.constant 0 : i32
    %c0_i32_0 = arith.constant 0 : i32
    %c0_i32_1 = arith.constant 0 : i32
    return %c0_i32, %c0_i32_0 : i32, i32
  }
  func.func @transform_3(%arg0: i32) -> (i32, i32) {
    %c0_i32 = arith.constant 0 : i32
    %c0_i32_0 = arith.constant 0 : i32
    %c0_i32_1 = arith.constant 0 : i32
    return %c0_i32, %c0_i32_0 : i32, i32
  }
  func.func @transform_4(%arg0: i32) -> (i32, i32) {
    %c0_i32 = arith.constant 0 : i32
    %c0_i32_0 = arith.constant 0 : i32
    %c0_i32_1 = arith.constant 0 : i32
    return %c0_i32, %c0_i32_0 : i32, i32
  }
  func.func @transform_5(%arg0: i32) -> (i32, i32) {
    %c0_i32 = arith.constant 0 : i32
    %c0_i32_0 = arith.constant 0 : i32
    %c0_i32_1 = arith.constant 0 : i32
    return %c0_i32, %c0_i32_0 : i32, i32
  }
  func.func @transform_6(%arg0: i32) -> (i32, i32) {
    %c0_i32 = arith.constant 0 : i32
    %c0_i32_0 = arith.constant 0 : i32
    %c0_i32_1 = arith.constant 0 : i32
    return %c0_i32, %c0_i32_0 : i32, i32
  }
  func.func @transform_7(%arg0: i32) -> (i32, i32) {
    %c0_i32 = arith.constant 0 : i32
    %c0_i32_0 = arith.constant 0 : i32
    %c0_i32_1 = arith.constant 0 : i32
    return %c0_i32, %c0_i32_0 : i32, i32
  }
  func.func @transform_8(%arg0: i32) -> (i32, i32) {
    %c0_i32 = arith.constant 0 : i32
    %c0_i32_0 = arith.constant 0 : i32
    %c0_i32_1 = arith.constant 0 : i32
    return %c0_i32, %c0_i32_0 : i32, i32
  }
  func.func @transform_9(%arg0: i32) -> (i32, i32) {
    %c0_i32 = arith.constant 0 : i32
    %c0_i32_0 = arith.constant 0 : i32
    return %arg0, %c0_i32 : i32, i32
  }
}

</mosaic_0001>

<bundles_post_ra>
// kernel: q_critic_forward.1
= control target key start
LH: loop header
LB: loop body
LE: loop exit
PB: predicated region body
PF: predicated region fallthrough
CT: control target
= control target key end

     0   :  { %vm41_vm0 = vcmask 1043456   ;;  %v499_v0 = vmov 0.0|0.0   ;;  %v500_v1 = vmov 0.0   ;;  %vm501_vm1 = vmmov 1   ;;  %s634_s2 = inlined_call_operand.vmem [shape: f32[12,64], index: 2, kind: input, shape index: {}]   ;;  %s635_s3 = inlined_call_operand.vmem [shape: f32[4,64], index: 3, kind: input, shape index: {}]   ;;  %s636_s1 = inlined_call_operand.vmem [shape: f32[8,4], index: 1, kind: input, shape index: {}]   ;;  %s637_s5 = inlined_call_operand.vmem [shape: f32[64,64], index: 5, kind: input, shape index: {}]   ;;  %s638_s0 = inlined_call_operand.vmem [shape: f32[8,12], index: 0, kind: input, shape index: {}]   ;;  %s639_s7 = inlined_call_operand.vmem [shape: f32[64,2], index: 7, kind: input, shape index: {}]   ;;  %s640_s4 = inlined_call_operand.vmem [shape: f32[1,64], index: 4, kind: input, shape index: {}]   ;;  %s641_s6 = inlined_call_operand.vmem [shape: f32[1,64], index: 6, kind: input, shape index: {}]   ;;  %s642_s8 = inlined_call_operand.vmem [shape: f32[1,2], index: 8, kind: input, shape index: {}]   ;;  %s643_s9 = inlined_call_operand.vmem [shape: f32[8,2], index: 9, kind: output, shape index: {}]  }
   0x1   :  { %467 = vmatprep.subr.bf16.mxu1 %v499_v0  ;;  %417 = vmatprep.subr.mxu0 %v500_v1  ;;  %v33_v2 = vld [vmem:[%s634_s2] sm:$0xff]  ;;  %v34_v3 = vld [vmem:[%s634_s2 + $0x8] sm:$0xf]  ;;  %vm469_vm2 = vmpackc.low %vm41_vm0, %vm501_vm1  ;;  %vm37_vm3 = vcmask 31744   ;;  %vm502_vm4 = vmmov 0   ;;  %vm115_vm5 = vcmask 97280  }
   0x2   :  { %v468_v4 = vpack.c.bf16 %v34_v3, %v33_v2  ;;  %v36_v5 = vld [vmem:[%s635_s3] sm:$0xf]  ;;  %419 = vmatprep.mubr.msk.f32.mxu0 %vm502_vm4, %v500_v1  ;;  %426 = vmatprep.mubr.msk.f32.mxu1 %vm502_vm4, %v500_v1  ;;  %v202_v8 = vld [vmem:[%s637_s5 + $0x8] sm:$0xff]  ;;  %v203_v9 = vld [vmem:[%s637_s5 + $0x10] sm:$0xff]  ;;  %vm216_vm6 = vcmask 523264   ;;  %vm379_vm7 = vcmask 15360  }
   0x3   :  { %v35_v6 = vld [vmem:[%s636_s1] sm:$0xff]  ;;  %418 = vmatpush3.msk.msra.mxu0 %vm41_vm0, %v36_v5  ;;  %v204_v12 = vld [vmem:[%s637_s5 + $0x18] sm:$0xff]  ;;  %v206_v15 = vld [vmem:[%s637_s5 + $0x28] sm:$0xff] }
   0x4   :  { %v201_v7 = vld [vmem:[%s637_s5] sm:$0xff]  ;;  %470 = vmatpush3.bf16.msk.msra.mxu1 %vm469_vm2, %v468_v4  ;;  %420 = vmatmul.mubr.msk.f32.vlgmr.msra.gmra.mrb[0].mxu0 %vm37_vm3, %v35_v6  ;;  %v475_v13 = vpack.c.bf16 %v204_v12, %v203_v9  ;;  %v207_v17 = vld [vmem:[%s637_s5 + $0x30] sm:$0xff]  ;;  %v208_v18 = vld [vmem:[%s637_s5 + $0x38] sm:$0xff] }
   0x5   :  { %v32_v10 = vld [vmem:[%s638_s0] sm:$0xff]  ;;  %v472_v11 = vpack.c.bf16 %v202_v8, %v201_v7  ;;  %471 = vmatprep.subr.bf16.mxu0 %v499_v0  ;;  %445 = vmatprep.mubr.msk.f32.mxu0 %vm502_vm4, %v500_v1  ;;  %v481_v19 = vpack.c.bf16 %v208_v18, %v207_v17  ;;  %v292_v21 = vld [vmem:[%s639_s7 + $0x8] sm:$0xff]  ;;  %v293_v22 = vld [vmem:[%s639_s7 + $0x10] sm:$0xff] }
   0x6   :  { %483 = vmatprep.subr.bf16.mxu1 %v499_v0  ;;  %v205_v14 = vld [vmem:[%s637_s5 + $0x20] sm:$0xff]  ;;  %v294_v24 = vld [vmem:[%s639_s7 + $0x18] sm:$0xff]  ;;  %v296_v27 = vld [vmem:[%s639_s7 + $0x28] sm:$0xff] }
   0x7   :  { %473 = vmatpush3.bf16.msra.mxu0 %v472_v11  ;;  %427 = vmatmul.mubr.msk.f32.vlgmr.msra.gmra.mrb[0].mxu1 %vm115_vm5, %v32_v10  ;;  %v478_v16 = vpack.c.bf16 %v206_v15, %v205_v14  ;;  %v291_v20 = vld [vmem:[%s639_s7] sm:$0xff]  ;;  %v487_v25 = vpack.c.bf16 %v294_v24, %v293_v22  ;;  %v297_v37 = vld [vmem:[%s639_s7 + $0x30] sm:$0xff]  ;;  %v298_v38 = vld [vmem:[%s639_s7 + $0x38] sm:$0xff] }
   0x8   :  { %474 = vmatprep.subr.bf16.mxu0 %v499_v0  ;;  %464 = vmatprep.mubr.msk.f32.mxu1 %vm502_vm4, %v500_v1  ;;  %v484_v23 = vpack.c.bf16 %v292_v21, %v291_v20  ;;  %v295_v26 = vld [vmem:[%s639_s7 + $0x20] sm:$0xff]  ;;  %v493_v39 = vpack.c.bf16 %v298_v38, %v297_v37 }
   0x9   :  { %v490_v28 = vpack.c.bf16 %v296_v27, %v295_v26  ;;  %v389_v32 = vld [vmem:[%s640_s4] ss:$0 sm:$0xff] }
   0xa   :  { %485 = vmatpush3.bf16.msra.mxu1 %v484_v23  ;;  %v390_v40 = vld [vmem:[%s641_s6] ss:$0 sm:$0xff] }
   0xb   :  { %476 = vmatpush3.bf16.msra.mxu0 %v475_v13  ;;  %486 = vmatprep.subr.bf16.mxu1 %v499_v0  ;;  %v392_v45 = vld [vmem:[%s642_s8] ss:$0 sm:$0xff] }
   0xc   :  { %477 = vmatprep.subr.bf16.mxu0 %v499_v0 }
   0xe   :  { %488 = vmatpush3.bf16.msra.mxu1 %v487_v25 }
   0xf   :  { %479 = vmatpush3.bf16.msra.mxu0 %v478_v16  ;;  %489 = vmatprep.subr.bf16.mxu1 %v499_v0 }
  0x10   :  { %480 = vmatprep.subr.bf16.mxu0 %v499_v0 }
  0x12   :  { %491 = vmatpush3.bf16.msra.mxu1 %v490_v28 }
  0x13   :  { %482 = vmatpush3.bf16.msra.mxu0 %v481_v19  ;;  %492 = vmatprep.subr.bf16.mxu1 %v499_v0 }
  0x16   :  { %494 = vmatpush3.bf16.msra.mxu1 %v493_v39 }
  0xd7   :  { %v111_v29 = vpop.f32.mrb[0].mxu0 }
  0xd8   :  { %v421_v30 = vpop.f32.mrb[1].mxu0 }
  0xda   :  { %v188_v31 = vpop.f32.mrb[0].mxu1 }
  0xdb   :  { %v189_v33 = vadd.f32 %v188_v31, %v111_v29  ;;  %v428_v34 = vpop.f32.mrb[1].mxu1 }
  0xdd   :  { %v199_v35 = vadd.f32 %v389_v32, %v189_v33 }
  0xdf   :  { %v200_v36 = vmax.f32 %v199_v35, 0.0 }
  0xe1   :  { %446 = vmatmul.mubr.msk.f32.vlgmr.msra.gmra.mrb[2].mxu0 %vm216_vm6, %v200_v36 }
 0x1b4   :  { %v286_v41 = vpop.f32.mrb[2].mxu0 }
 0x1b5   :  { %v287_v42 = vadd.f32 %v390_v40, %v286_v41  ;;  %v447_v43 = vpop.f32.mrb[3].mxu0 }
 0x1b7   :  { %v290_v44 = vmax.f32 %v287_v42, 0.0 }
 0x1b9   :  { %465 = vmatmul.mubr.msk.f32.vlgmr.msra.gmra.mrb[2].mxu1 %vm216_vm6, %v290_v44 }
 0x28c   :  { %v375_v46 = vpop.f32.mrb[2].mxu1 }
 0x28d   :  { %v376_v47 = vadd.f32 %v392_v45, %v375_v46  ;;  %v466_v48 = vpop.f32.mrb[3].mxu1 }
 0x28f   :  { %380 = vst.msk [vmem:[%s643_s9] sm:$0xff] %vm379_vm7, %v376_v47 }

</bundles_post_ra>
